<compile_context>
chip_gen: v7x
topology: tpu7x:2x2x1
jax: 0.10.0
libtpu: 0.0.40
codegen_flags: <defaults>
</compile_context>

<pallas_src>
import jax
import jax.numpy as jnp
from jax.experimental import pallas as pl
from jax.experimental.pallas import tpu as pltpu

LN_EPS = 1e-5  # nn.LayerNorm default eps


# ----------------------------------------------------------------------------- kernel
def _layernorm_kernel(x_ref, g_ref, b_ref, o_ref):
    # x: (TM, D) row tile; g/b: (1, D); o: (TM, D)
    x = x_ref[...].astype(jnp.float32)
    mean = jnp.mean(x, axis=-1, keepdims=True)
    d = x - mean
    var = jnp.mean(d * d, axis=-1, keepdims=True)
    y = d * jax.lax.rsqrt(var + LN_EPS)           # rsqrt -> EUP slot (off the VALU)
    o_ref[...] = (y * g_ref[...] + b_ref[...]).astype(o_ref.dtype)


# ----------------------------------------------------------------------------- wrapper
def _round_up(n, m):
    return ((n + m - 1) // m) * m


def _layernorm_rows(rows, gamma, beta, *, tile_rows=512):
    """rows: (M, D) -> LayerNorm over the last dim, tiled & pipelined over M."""
    M, D = rows.shape
    # Row tile: multiple of 8 (sublane), capped by problem size (512-1024 hits ~85% of
    # HBM roofline per the Pallas TPU notes).
    tm = min(tile_rows, _round_up(M, 8))
    m_pad = _round_up(M, tm)
    if m_pad != M:
        # Padded rows normalize to `beta` (finite) and are sliced off below.
        rows = jnp.pad(rows, ((0, m_pad - M), (0, 0)))
    grid = (m_pad // tm,)

    # VMEM budget: 2 buffers x (input tile + output tile) + tiny params, with headroom.
    tile_bytes = tm * D * 4
    vmem_limit = int(min(96 << 20, max(8 << 20, 6 * tile_bytes)))

    out = pl.pallas_call(
        _layernorm_kernel,
        out_shape=jax.ShapeDtypeStruct((m_pad, D), rows.dtype),
        grid_spec=pltpu.PrefetchScalarGridSpec(
            num_scalar_prefetch=0,
            grid=grid,
            in_specs=[
                pl.BlockSpec((tm, D), lambda i: (i, 0)),   # row tile
                pl.BlockSpec((1, D), lambda i: (0, 0)),    # gamma (resident)
                pl.BlockSpec((1, D), lambda i: (0, 0)),    # beta  (resident)
            ],
            out_specs=pl.BlockSpec((tm, D), lambda i: (i, 0)),
        ),
        compiler_params=pltpu.CompilerParams(
            dimension_semantics=("parallel",),   # rows independent -> megacore split on v7x
            vmem_limit_bytes=vmem_limit,
        ),
    )(rows, gamma.reshape(1, D), beta.reshape(1, D))
    return out[:M]


def prenorm_out_forward(x, x_resize, params, fn, *args, **kwargs):
    """PreNorm_out.forward: fn(LayerNorm(x), LayerNorm(x_resize), *args, **kwargs).

    The same LayerNorm parameters are applied to both inputs; both tensors are
    normalized by a single tiled pallas_call (rows concatenated)."""
    gamma, beta = params["gamma"], params["beta"]
    D = x.shape[-1]
    assert x_resize.shape[-1] == D and gamma.shape == (D,) and beta.shape == (D,)

    x_rows = x.reshape(-1, D).astype(jnp.float32)
    r_rows = x_resize.reshape(-1, D).astype(jnp.float32)
    m1 = x_rows.shape[0]

    normed = _layernorm_rows(jnp.concatenate([x_rows, r_rows], axis=0), gamma, beta)

    temp = normed[:m1].reshape(x.shape)
    temp1 = normed[m1:].reshape(x_resize.shape)
    # TODO(synk): `self.fn` is an arbitrary injected sub-module in the PyTorch code
    # (e.g. an attention block); it is executed here as a plain JAX callable outside
    # the Pallas kernel since it has no fixed definition in this module.
    return fn(temp, temp1, *args, **kwargs)


# ----------------------------------------------------------------------------- main
if __name__ == "__main__":
    # Small shapes consistent with PreNorm_out: two token streams sharing hidden dim.
    batch, seq, seq_resize, dim = 2, 8, 16, 32

    key = jax.random.PRNGKey(0)
    k = jax.random.split(key, 4)
    params = {
        # nn.LayerNorm(dim) affine params (non-trivial values to exercise the affine path)
        "gamma": 1.0 + 0.1 * jax.random.normal(k[0], (dim,), jnp.float32),
        "beta": 0.1 * jax.random.normal(k[1], (dim,), jnp.float32),
    }
    x = jax.random.normal(k[2], (batch, seq, dim), jnp.float32)
    x_resize = jax.random.normal(k[3], (batch, seq_resize, dim), jnp.float32)

    # Placeholder for the injected `fn`: return both normalized tensors unchanged.
    fn = lambda a, b: (a, b)

    temp, temp1 = prenorm_out_forward(x, x_resize, params, fn)
    temp, temp1 = jax.block_until_ready((temp, temp1))

    # Pure-JAX reference for correctness.
    def ln_ref(v):
        mean = jnp.mean(v, axis=-1, keepdims=True)
        var = jnp.mean((v - mean) ** 2, axis=-1, keepdims=True)
        return (v - mean) * jax.lax.rsqrt(var + LN_EPS) * params["gamma"] + params["beta"]

    assert temp.shape == x.shape and temp1.shape == x_resize.shape
    assert bool(jnp.all(jnp.isfinite(temp))) and bool(jnp.all(jnp.isfinite(temp1)))
    assert jnp.allclose(temp, ln_ref(x), atol=1e-5, rtol=1e-5)
    assert jnp.allclose(temp1, ln_ref(x_resize), atol=1e-5, rtol=1e-5)
    print("KERNEL_OK")
</pallas_src>

<mosaic_0001>
module attributes {stable_mosaic.version = 11 : i64} {
  func.func @_layernorm_kernel(%arg0: i32, %arg1: memref<48x32xf32, #tpu.memory_space<vmem>>, %arg2: memref<1x32xf32, #tpu.memory_space<vmem>>, %arg3: memref<1x32xf32, #tpu.memory_space<vmem>>, %arg4: memref<48x32xf32, #tpu.memory_space<vmem>>) attributes {dimension_semantics = [#tpu.dimension_semantics<parallel>], iteration_bounds = array<i64: 1>, scalar_prefetch = 0 : i64, scratch_operands = 0 : i64, tpu.core_type = #tpu.core_type<tc>, window_params = [{transform_indices = @transform_0, window_bounds = array<i64: 48, 32>}, {pipeline_mode = #tpu.pipeline_mode<synchronous>, transform_indices = @transform_1, window_bounds = array<i64: 1, 32>}, {pipeline_mode = #tpu.pipeline_mode<synchronous>, transform_indices = @transform_2, window_bounds = array<i64: 1, 32>}, {transform_indices = @transform_3, window_bounds = array<i64: 48, 32>}]} {
    %c0 = arith.constant 0 : index
    %c0_0 = arith.constant 0 : index
    %0 = vector.load %arg1[%c0, %c0_0] : memref<48x32xf32, #tpu.memory_space<vmem>>, vector<48x32xf32>
    %cst = arith.constant dense<0.000000e+00> : vector<48xf32>
    %1 = vector.multi_reduction <add>, %0, %cst [1] : vector<48x32xf32> to vector<48xf32>
    %2 = vector.shape_cast %1 : vector<48xf32> to vector<48x1xf32>
    %cst_1 = arith.constant 3.200000e+01 : f32
    %3 = vector.broadcast %cst_1 : f32 to vector<48x1xf32>
    %4 = arith.divf %2, %3 : vector<48x1xf32>
    %5 = vector.broadcast %4 : vector<48x1xf32> to vector<48x32xf32>
    %6 = arith.subf %0, %5 : vector<48x32xf32>
    %7 = arith.mulf %6, %6 : vector<48x32xf32>
    %cst_2 = arith.constant dense<0.000000e+00> : vector<48xf32>
    %8 = vector.multi_reduction <add>, %7, %cst_2 [1] : vector<48x32xf32> to vector<48xf32>
    %9 = vector.shape_cast %8 : vector<48xf32> to vector<48x1xf32>
    %cst_3 = arith.constant 3.200000e+01 : f32
    %10 = vector.broadcast %cst_3 : f32 to vector<48x1xf32>
    %11 = arith.divf %9, %10 : vector<48x1xf32>
    %cst_4 = arith.constant 9.99999974E-6 : f32
    %12 = vector.broadcast %cst_4 : f32 to vector<48x1xf32>
    %13 = arith.addf %11, %12 : vector<48x1xf32>
    %14 = math.rsqrt %13 : vector<48x1xf32>
    %15 = vector.broadcast %14 : vector<48x1xf32> to vector<48x32xf32>
    %16 = arith.mulf %6, %15 : vector<48x32xf32>
    %c0_5 = arith.constant 0 : index
    %c0_6 = arith.constant 0 : index
    %17 = vector.load %arg2[%c0_5, %c0_6] : memref<1x32xf32, #tpu.memory_space<vmem>>, vector<1x32xf32>
    %18 = vector.broadcast %17 : vector<1x32xf32> to vector<48x32xf32>
    %19 = arith.mulf %16, %18 : vector<48x32xf32>
    %c0_7 = arith.constant 0 : index
    %c0_8 = arith.constant 0 : index
    %20 = vector.load %arg3[%c0_7, %c0_8] : memref<1x32xf32, #tpu.memory_space<vmem>>, vector<1x32xf32>
    %21 = vector.broadcast %20 : vector<1x32xf32> to vector<48x32xf32>
    %22 = arith.addf %19, %21 : vector<48x32xf32>
    %c0_9 = arith.constant 0 : index
    %c0_10 = arith.constant 0 : index
    %23 = vector.load %arg4[%c0_9, %c0_10] : memref<48x32xf32, #tpu.memory_space<vmem>>, vector<48x32xf32>
    tpu.vector_store %arg4[%c0_9, %c0_10], %22 {strides = array<i32>} : memref<48x32xf32, #tpu.memory_space<vmem>>, vector<48x32xf32>,
    return
  }
  func.func @transform_0(%arg0: i32) -> (i32, i32) {
    %c0_i32 = arith.constant 0 : i32
    %c0_i32_0 = arith.constant 0 : i32
    return %arg0, %c0_i32 : i32, i32
  }
  func.func @transform_1(%arg0: i32) -> (i32, i32) {
    %c0_i32 = arith.constant 0 : i32
    %c0_i32_0 = arith.constant 0 : i32
    %c0_i32_1 = arith.constant 0 : i32
    return %c0_i32, %c0_i32_0 : i32, i32
  }
  func.func @transform_2(%arg0: i32) -> (i32, i32) {
    %c0_i32 = arith.constant 0 : i32
    %c0_i32_0 = arith.constant 0 : i32
    %c0_i32_1 = arith.constant 0 : i32
    return %c0_i32, %c0_i32_0 : i32, i32
  }
  func.func @transform_3(%arg0: i32) -> (i32, i32) {
    %c0_i32 = arith.constant 0 : i32
    %c0_i32_0 = arith.constant 0 : i32
    return %arg0, %c0_i32 : i32, i32
  }
}

</mosaic_0001>

<bundles_post_ra>
// kernel: tpu_custom_call.1
= control target key start
LH: loop header
LB: loop body
LE: loop exit
PB: predicated region body
PF: predicated region fallthrough
CT: control target
= control target key end

     0   :  { %vm20_vm0 = vcmask 261120   ;;  %s245_s0 = inlined_call_operand.vmem [shape: f32[48,32], index: 0, kind: input, shape index: {}]   ;;  %s246_s1 = inlined_call_operand.vmem [shape: f32[1,32], index: 1, kind: input, shape index: {}]   ;;  %s247_s2 = inlined_call_operand.vmem [shape: f32[1,32], index: 2, kind: input, shape index: {}]   ;;  %s248_s3 = inlined_call_operand.vmem [shape: f32[48,32], index: 3, kind: output, shape index: {}]  }
   0x1   :  { %v14_v0 = vld [vmem:[%s245_s0] sm:$0xff]  ;;  %v16_v1 = vld [vmem:[%s245_s0 + $0x10] sm:$0xff]  ;;  %v15_v2 = vld [vmem:[%s245_s0 + $0x8] sm:$0xff] }
   0x2   :  { %v21_v3 = vsel %vm20_vm0, %v14_v0, 0.0  ;;  %v27_v4 = vsel %vm20_vm0, %v16_v1, 0.0  ;;  %v17_v5 = vld [vmem:[%s245_s0 + $0x18] sm:$0xff]  ;;  %v24_v6 = vsel %vm20_vm0, %v15_v2, 0.0  ;;  %v18_v8 = vld [vmem:[%s245_s0 + $0x20] sm:$0xff]  ;;  %v19_v9 = vld [vmem:[%s245_s0 + $0x28] sm:$0xff] }
   0x3   :  { %22 = vadd.xlane.f32.xlu0 %v21_v3  ;;  %28 = vadd.xlane.f32.xlu1 %v27_v4  ;;  %v30_v7 = vsel %vm20_vm0, %v17_v5, 0.0  ;;  %v33_v10 = vsel %vm20_vm0, %v18_v8, 0.0  ;;  %v36_v11 = vsel %vm20_vm0, %v19_v9, 0.0  ;;  %v136_v60 = vld [vmem:[%s246_s1] ss:$0 sm:$0xff] }
   0x4   :  { %v137_v63 = vld [vmem:[%s247_s2] ss:$0 sm:$0xff] }
   0x7   :  { %25 = vadd.xlane.f32.xlu0 %v24_v6  ;;  %31 = vadd.xlane.f32.xlu1 %v30_v7 }
   0xb   :  { %34 = vadd.xlane.f32.xlu0 %v33_v10  ;;  %37 = vadd.xlane.f32.xlu1 %v36_v11 }
  0x90   :  { %v23_v12 = vpop.xlane.xlu0 %22  ;;  %v29_v13 = vpop.xlane.xlu1 %28 }
  0x91   :  { %v40_v14 = vmul.f32 0.03125, %v23_v12  ;;  %v42_v15 = vmul.f32 0.03125, %v29_v13 }
  0x93   :  { %v46_v16 = vsub.f32 %v14_v0, %v40_v14  ;;  %v194_v17 = vsub.f32 %v16_v1, %v42_v15 }
  0x94   :  { %v26_v18 = vpop.xlane.xlu0 %25  ;;  %v32_v19 = vpop.xlane.xlu1 %31 }
  0x95   :  { %v41_v20 = vmul.f32 0.03125, %v26_v18  ;;  %v43_v21 = vmul.f32 0.03125, %v32_v19  ;;  %v52_v22 = vmul.f32 %v46_v16, %v46_v16  ;;  %v54_v23 = vmul.f32 %v194_v17, %v194_v17 }
  0x97   :  { %v47_v24 = vsub.f32 %v15_v2, %v41_v20  ;;  %v198_v25 = vsub.f32 %v17_v5, %v43_v21  ;;  %v58_v26 = vsel %vm20_vm0, %v52_v22, 0.0  ;;  %v64_v29 = vsel %vm20_vm0, %v54_v23, 0.0 }
  0x98   :  { %59 = vadd.xlane.f32.xlu0 %v58_v26  ;;  %v35_v27 = vpop.xlane.xlu0 %34  ;;  %v38_v28 = vpop.xlane.xlu1 %37 }
  0x99   :  { %v44_v30 = vmul.f32 0.03125, %v35_v27  ;;  %v45_v31 = vmul.f32 0.03125, %v38_v28  ;;  %v53_v32 = vmul.f32 %v47_v24, %v47_v24  ;;  %v55_v33 = vmul.f32 %v198_v25, %v198_v25 }
  0x9b   :  { %v50_v34 = vsub.f32 %v18_v8, %v44_v30  ;;  %v204_v35 = vsub.f32 %v19_v9, %v45_v31  ;;  %v61_v36 = vsel %vm20_vm0, %v53_v32, 0.0  ;;  %v67_v37 = vsel %vm20_vm0, %v55_v33, 0.0 }
  0x9c   :  { %65 = vadd.xlane.f32.xlu0 %v64_v29  ;;  %62 = vadd.xlane.f32.xlu1 %v61_v36 }
  0x9d   :  { %v56_v38 = vmul.f32 %v50_v34, %v50_v34  ;;  %v57_v39 = vmul.f32 %v204_v35, %v204_v35 }
  0x9f   :  { %v70_v40 = vsel %vm20_vm0, %v56_v38, 0.0  ;;  %v73_v41 = vsel %vm20_vm0, %v57_v39, 0.0 }
  0xa0   :  { %68 = vadd.xlane.f32.xlu1 %v67_v37  ;;  %71 = vadd.xlane.f32.xlu0 %v70_v40 }
  0xa4   :  { %74 = vadd.xlane.f32.xlu1 %v73_v41 }
 0x125   :  { %v60_v42 = vpop.xlane.xlu0 %59 }
 0x126   :  { %v76_v43 = vmul.f32 0.03125, %v60_v42 }
 0x128   :  { %v82_v44 = vadd.f32 1e-05, %v76_v43 }
 0x129   :  { %v63_v45 = vpop.xlane.xlu1 %62  ;;  %v66_v46 = vpop.xlane.xlu0 %65 }
 0x12a   :  { %138 = vrsqrt.f32 %v82_v44  ;;  %v77_v47 = vmul.f32 0.03125, %v63_v45  ;;  %v78_v48 = vmul.f32 0.03125, %v66_v46 }
 0x12c   :  { %v83_v49 = vadd.f32 1e-05, %v77_v47  ;;  %v84_v50 = vadd.f32 1e-05, %v78_v48 }
 0x12d   :  { %v69_v51 = vpop.xlane.xlu1 %68  ;;  %v72_v52 = vpop.xlane.xlu0 %71 }
 0x12e   :  { %140 = vrsqrt.f32 %v83_v49  ;;  %v79_v53 = vmul.f32 0.03125, %v69_v51  ;;  %v80_v54 = vmul.f32 0.03125, %v72_v52 }
 0x12f   :  { %142 = vrsqrt.f32 %v84_v50 }
 0x130   :  { %v85_v55 = vadd.f32 1e-05, %v79_v53  ;;  %v86_v56 = vadd.f32 1e-05, %v80_v54 }
 0x131   :  { %v75_v57 = vpop.xlane.xlu1 %74 }
 0x132   :  { %144 = vrsqrt.f32 %v85_v55  ;;  %v81_v58 = vmul.f32 0.03125, %v75_v57 }
 0x133   :  { %146 = vrsqrt.f32 %v86_v56 }
 0x134   :  { %v139_v59 = vpop.eup %138  ;;  %v87_v61 = vadd.f32 1e-05, %v81_v58 }
 0x135   :  { %v94_v62 = vmul.f32 %v139_v59, %v46_v16 }
 0x136   :  { %148 = vrsqrt.f32 %v87_v61 }
 0x137   :  { %v107_v0 = vmul.f32 %v136_v60, %v94_v62 }
 0x138   :  { %v141_v1 = vpop.eup %140 }
 0x139   :  { %v143_v2 = vpop.eup %142  ;;  %v120_v3 = vadd.f32 %v137_v63, %v107_v0  ;;  %v95_v4 = vmul.f32 %v141_v1, %v47_v24 }
 0x13a   :  { %v96_v5 = vmul.f32 %v143_v2, %v194_v17 }
 0x13b   :  { %126 = vst.msk [vmem:[%s248_s3] sm:$0xff] %vm20_vm0, %v120_v3  ;;  %v108_v6 = vmul.f32 %v136_v60, %v95_v4 }
 0x13c   :  { %v145_v7 = vpop.eup %144  ;;  %v109_v8 = vmul.f32 %v136_v60, %v96_v5 }
 0x13d   :  { %v147_v9 = vpop.eup %146  ;;  %v121_v10 = vadd.f32 %v137_v63, %v108_v6  ;;  %v97_v11 = vmul.f32 %v145_v7, %v198_v25 }
 0x13e   :  { %v122_v12 = vadd.f32 %v137_v63, %v109_v8  ;;  %v98_v13 = vmul.f32 %v147_v9, %v50_v34 }
 0x13f   :  { %127 = vst.msk [vmem:[%s248_s3 + $0x8] sm:$0xff] %vm20_vm0, %v121_v10  ;;  %v110_v14 = vmul.f32 %v136_v60, %v97_v11 }
 0x140   :  { %v149_v15 = vpop.eup %148  ;;  %128 = vst.msk [vmem:[%s248_s3 + $0x10] sm:$0xff] %vm20_vm0, %v122_v12  ;;  %v111_v16 = vmul.f32 %v136_v60, %v98_v13 }
 0x141   :  { %v123_v17 = vadd.f32 %v137_v63, %v110_v14  ;;  %v99_v18 = vmul.f32 %v149_v15, %v204_v35 }
 0x142   :  { %v124_v19 = vadd.f32 %v137_v63, %v111_v16 }
 0x143   :  { %129 = vst.msk [vmem:[%s248_s3 + $0x18] sm:$0xff] %vm20_vm0, %v123_v17  ;;  %v112_v20 = vmul.f32 %v136_v60, %v99_v18 }
 0x144   :  { %130 = vst.msk [vmem:[%s248_s3 + $0x20] sm:$0xff] %vm20_vm0, %v124_v19 }
 0x145   :  { %v125_v21 = vadd.f32 %v137_v63, %v112_v20 }
 0x147   :  { %131 = vst.msk [vmem:[%s248_s3 + $0x28] sm:$0xff] %vm20_vm0, %v125_v21 }

</bundles_post_ra>
